<compile_context>
chip_gen: v6e
topology: v6e:2x2x1
jax: 0.10.0
libtpu: 0.0.40
codegen_flags: <defaults>
</compile_context>

<pallas_src>
import functools

import jax
import jax.numpy as jnp
from jax.experimental import pallas as pl
from jax.experimental.pallas import tpu as pltpu

LANE = 128          # lane width (last dim)
ALIGN = 8 * LANE    # 1024: kernel covers a multiple-of-1024 prefix; jnp does the tail
TM_MAX = 2048       # max sublane rows per grid step
SPLIT_ROWS = 512    # min rows per block when splitting the grid for megacore/pipeline


def _kmeans_kernel(mids_ref, nxt_ref, base_ref, x_ref, out_ref, *, strip, n_strips):
    # mids_ref : SMEM f32[K-1]  midpoints between adjacent sorted centers (ascending)
    # nxt_ref  : SMEM i32[K-1]  ORIGINAL center index to write when x > mids[k]
    # base_ref : SMEM i32[1]    original index of the smallest center
    # x_ref    : VMEM f32[tm, 128]
    # out_ref  : VMEM i32[tm, 128]
    k_seg = mids_ref.shape[0]

    # Hoist all scalar (SMEM) reads and the base broadcast out of the strip loop.
    # Compares stay in scalar-operand form so no per-strip constant re-broadcast.
    base = base_ref[0]
    mids = [mids_ref[k] for k in range(k_seg)]
    nxts = [nxt_ref[k] for k in range(k_seg)]
    idx0 = jnp.full((strip, LANE), base, dtype=jnp.int32)

    @pl.loop(0, n_strips)
    def _(s):
        r0 = pl.multiple_of(s * strip, strip)
        x = x_ref[pl.ds(r0, strip), :]            # (strip, 128), vreg-resident
        idx = idx0
        for k in range(k_seg):                    # unrolled: 2 VALU ops / center
            # mids ascending => firing compares form a prefix; last write wins.
            # Strict '>' keeps exact-midpoint ties on the lower-VALUED center.
            idx = jnp.where(x > mids[k], nxts[k], idx)
        out_ref[pl.ds(r0, strip), :] = idx        # one store per strip


def _argmin_ref(xf, centers):
    """Plain-jnp nearest-center (used for sub-1024-element tails / tiny inputs)."""
    return jnp.argmin(jnp.abs(xf[:, None] - centers[None, :]), axis=1).astype(jnp.int32)


def _round_up(a, b):
    return -(-a // b) * b


def _choose_tiling(rows):
    """Pick (tm, strip) for a rows x 128 slab; rows is a multiple of 8."""
    if rows >= 2 * SPLIT_ROWS:
        # >=2 (target 4) grid steps of >=SPLIT_ROWS rows each: lets the 'parallel'
        # axis shard across v7x's two TensorCores while each step still amortizes
        # the ~0.35 us per-step overhead.
        tm = max(SPLIT_ROWS, min(TM_MAX, _round_up(pl.cdiv(rows, 4), 64)))
    else:
        tm = rows                                  # single block (multiple of 8)
    for strip in (64, 32, 16, 8):
        if tm % strip == 0:
            return tm, strip
    return tm, tm                                  # unreachable: tm is a multiple of 8


def kmeans_compress(x, centers):
    """int32 nearest-center (L1) indices, same shape as x."""
    orig_shape = x.shape
    # TODO(synk): bf16 payloads are upcast here; keeping bf16 end-to-end (comparing
    # against bf16-safe mids) would halve input HBM traffic on v6e/v7x.
    xf = jnp.asarray(x).reshape(-1)
    if xf.dtype != jnp.float32:
        xf = xf.astype(jnp.float32)
    n = xf.size
    centers = jnp.asarray(centers).reshape(-1).astype(jnp.float32)
    k_total = centers.shape[0]

    if k_total == 1:
        return jnp.zeros(orig_shape, dtype=jnp.int32)
    if n < ALIGN:
        return _argmin_ref(xf, centers).reshape(orig_shape)

    # --- preprocess the (tiny) center table outside the kernel ---
    order = jnp.argsort(centers)                   # stable sort
    c_sorted = centers[order]
    orig_idx = order.astype(jnp.int32)
    # Collapse duplicate center values onto their smallest ORIGINAL index so ties
    # among equal-valued centers follow torch's first-min rule.
    eq = c_sorted[:, None] == c_sorted[None, :]
    orig_first = jnp.min(
        jnp.where(eq, orig_idx[None, :], jnp.int32(k_total)), axis=1)

    mids = c_sorted[:-1] + 0.5 * (c_sorted[1:] - c_sorted[:-1])   # f32[K-1], overflow-safe
    nxt = orig_first[1:]                                          # i32[K-1]
    base = orig_first[:1]                                         # i32[1]

    # --- 1024-aligned prefix handled by the kernel, <=1023-element tail by jnp ---
    n_main = (n // ALIGN) * ALIGN
    rows = n_main // LANE                          # multiple of 8
    x2d = xf[:n_main].reshape(rows, LANE)          # prefix slice: no pad copy

    tm, strip = _choose_tiling(rows)
    n_strips = tm // strip
    grid = (pl.cdiv(rows, tm),)                    # partial last block handled by Pallas

    kernel = functools.partial(_kmeans_kernel, strip=strip, n_strips=n_strips)

    out2d = pl.pallas_call(
        kernel,
        out_shape=jax.ShapeDtypeStruct((rows, LANE), jnp.int32),
        grid=grid,
        in_specs=[
            pl.BlockSpec(memory_space=pltpu.MemorySpace.SMEM),   # mids
            pl.BlockSpec(memory_space=pltpu.MemorySpace.SMEM),   # nxt
            pl.BlockSpec(memory_space=pltpu.MemorySpace.SMEM),   # base
            pl.BlockSpec((tm, LANE), lambda i: (i, 0)),          # x
        ],
        out_specs=pl.BlockSpec((tm, LANE), lambda i: (i, 0)),
        # TODO(synk): verify in the Mosaic dump that this axis really spans both v7x
        # TensorCores; if not, switch to pltpu.CORE_PARALLEL / explicit core axis.
        compiler_params=pltpu.CompilerParams(
            dimension_semantics=("parallel",)),
    )(mids, nxt, base, x2d)

    out = out2d.reshape(-1)
    if n_main < n:
        out = jnp.concatenate([out, _argmin_ref(xf[n_main:], centers)])
    return out.reshape(orig_shape)


if __name__ == "__main__":
    key = jax.random.PRNGKey(0)
    k_a, k_b, k_c, k_x, k_perm = jax.random.split(key, 5)

    # Deterministic "learned" centers; deliberately UNSORTED to exercise the
    # sorted-scan + original-index remap path.
    K = 16
    centers = jax.random.permutation(
        k_perm, jnp.linspace(-1.0, 1.0, K, dtype=jnp.float32))

    def ref(xv):
        return jnp.argmin(jnp.abs(xv[:, None] - centers[None, :]),
                          axis=1).astype(jnp.int32)

    # Primary case: flat 1-D value tensor (as the module's broadcast implies).
    x = jax.random.normal(k_x, (2048,), dtype=jnp.float32)
    out = jax.block_until_ready(kmeans_compress(x, centers))
    assert out.shape == x.shape and out.dtype == jnp.int32
    assert bool(jnp.all(out == ref(x)))

    # Ragged size: aligned-prefix kernel + jnp tail (no pad copy).
    x2 = jax.random.normal(k_a, (70000,), dtype=jnp.float32)
    out2 = jax.block_until_ready(kmeans_compress(x2, centers))
    assert bool(jnp.all(out2 == ref(x2)))

    # Larger ragged size: multi-step grid (megacore-splittable) + partial last block.
    x3 = jax.random.normal(k_b, (200000,), dtype=jnp.float32)
    out3 = jax.block_until_ready(kmeans_compress(x3, centers))
    assert bool(jnp.all(out3 == ref(x3)))

    # Tiny input: pure-jnp fallback path.
    x4 = jax.random.normal(k_c, (100,), dtype=jnp.float32)
    out4 = jax.block_until_ready(kmeans_compress(x4, centers))
    assert bool(jnp.all(out4 == ref(x4)))

    print("KERNEL_OK")
</pallas_src>

<mosaic_0001>
module attributes {stable_mosaic.version = 11 : i64} {
  func.func @_kmeans_kernel(%arg0: i32, %arg1: memref<15xf32, #tpu.memory_space<smem>>, %arg2: memref<15xi32, #tpu.memory_space<smem>>, %arg3: memref<1xi32, #tpu.memory_space<smem>>, %arg4: memref<16x128xf32, #tpu.memory_space<vmem>>, %arg5: memref<16x128xi32, #tpu.memory_space<vmem>>) attributes {dimension_semantics = [#tpu.dimension_semantics<parallel>], iteration_bounds = array<i64: 1>, scalar_prefetch = 0 : i64, scratch_operands = 0 : i64, tpu.core_type = #tpu.core_type<tc>, window_params = [{transform_indices = @transform_0, window_bounds = array<i64: 15>}, {transform_indices = @transform_1, window_bounds = array<i64: 15>}, {transform_indices = @transform_2, window_bounds = array<i64: 1>}, {transform_indices = @transform_3, window_bounds = array<i64: 16, 128>}, {transform_indices = @transform_4, window_bounds = array<i64: 16, 128>}]} {
    %c0 = arith.constant 0 : index
    %0 = memref.load %arg3[%c0] : memref<1xi32, #tpu.memory_space<smem>>
    %c0_0 = arith.constant 0 : index
    %1 = memref.load %arg1[%c0_0] : memref<15xf32, #tpu.memory_space<smem>>
    %c1 = arith.constant 1 : index
    %2 = memref.load %arg1[%c1] : memref<15xf32, #tpu.memory_space<smem>>
    %c2 = arith.constant 2 : index
    %3 = memref.load %arg1[%c2] : memref<15xf32, #tpu.memory_space<smem>>
    %c3 = arith.constant 3 : index
    %4 = memref.load %arg1[%c3] : memref<15xf32, #tpu.memory_space<smem>>
    %c4 = arith.constant 4 : index
    %5 = memref.load %arg1[%c4] : memref<15xf32, #tpu.memory_space<smem>>
    %c5 = arith.constant 5 : index
    %6 = memref.load %arg1[%c5] : memref<15xf32, #tpu.memory_space<smem>>
    %c6 = arith.constant 6 : index
    %7 = memref.load %arg1[%c6] : memref<15xf32, #tpu.memory_space<smem>>
    %c7 = arith.constant 7 : index
    %8 = memref.load %arg1[%c7] : memref<15xf32, #tpu.memory_space<smem>>
    %c8 = arith.constant 8 : index
    %9 = memref.load %arg1[%c8] : memref<15xf32, #tpu.memory_space<smem>>
    %c9 = arith.constant 9 : index
    %10 = memref.load %arg1[%c9] : memref<15xf32, #tpu.memory_space<smem>>
    %c10 = arith.constant 10 : index
    %11 = memref.load %arg1[%c10] : memref<15xf32, #tpu.memory_space<smem>>
    %c11 = arith.constant 11 : index
    %12 = memref.load %arg1[%c11] : memref<15xf32, #tpu.memory_space<smem>>
    %c12 = arith.constant 12 : index
    %13 = memref.load %arg1[%c12] : memref<15xf32, #tpu.memory_space<smem>>
    %c13 = arith.constant 13 : index
    %14 = memref.load %arg1[%c13] : memref<15xf32, #tpu.memory_space<smem>>
    %c14 = arith.constant 14 : index
    %15 = memref.load %arg1[%c14] : memref<15xf32, #tpu.memory_space<smem>>
    %c0_1 = arith.constant 0 : index
    %16 = memref.load %arg2[%c0_1] : memref<15xi32, #tpu.memory_space<smem>>
    %c1_2 = arith.constant 1 : index
    %17 = memref.load %arg2[%c1_2] : memref<15xi32, #tpu.memory_space<smem>>
    %c2_3 = arith.constant 2 : index
    %18 = memref.load %arg2[%c2_3] : memref<15xi32, #tpu.memory_space<smem>>
    %c3_4 = arith.constant 3 : index
    %19 = memref.load %arg2[%c3_4] : memref<15xi32, #tpu.memory_space<smem>>
    %c4_5 = arith.constant 4 : index
    %20 = memref.load %arg2[%c4_5] : memref<15xi32, #tpu.memory_space<smem>>
    %c5_6 = arith.constant 5 : index
    %21 = memref.load %arg2[%c5_6] : memref<15xi32, #tpu.memory_space<smem>>
    %c6_7 = arith.constant 6 : index
    %22 = memref.load %arg2[%c6_7] : memref<15xi32, #tpu.memory_space<smem>>
    %c7_8 = arith.constant 7 : index
    %23 = memref.load %arg2[%c7_8] : memref<15xi32, #tpu.memory_space<smem>>
    %c8_9 = arith.constant 8 : index
    %24 = memref.load %arg2[%c8_9] : memref<15xi32, #tpu.memory_space<smem>>
    %c9_10 = arith.constant 9 : index
    %25 = memref.load %arg2[%c9_10] : memref<15xi32, #tpu.memory_space<smem>>
    %c10_11 = arith.constant 10 : index
    %26 = memref.load %arg2[%c10_11] : memref<15xi32, #tpu.memory_space<smem>>
    %c11_12 = arith.constant 11 : index
    %27 = memref.load %arg2[%c11_12] : memref<15xi32, #tpu.memory_space<smem>>
    %c12_13 = arith.constant 12 : index
    %28 = memref.load %arg2[%c12_13] : memref<15xi32, #tpu.memory_space<smem>>
    %c13_14 = arith.constant 13 : index
    %29 = memref.load %arg2[%c13_14] : memref<15xi32, #tpu.memory_space<smem>>
    %c14_15 = arith.constant 14 : index
    %30 = memref.load %arg2[%c14_15] : memref<15xi32, #tpu.memory_space<smem>>
    %31 = vector.broadcast %0 : i32 to vector<16x128xi32>
    %c0_i32 = arith.constant 0 : i32
    %c1_i32 = arith.constant 1 : i32
    %32 = arith.muli %c0_i32, %c1_i32 : i32
    %c0_i32_16 = arith.constant 0 : i32
    %33 = arith.addi %c0_i32_16, %32 : i32
    %c16_i32 = arith.constant 16 : i32
    %34 = arith.muli %33, %c16_i32 : i32
    %35 = tpu.assume_multiple %34, 16 : i32
    %36 = arith.index_cast %35 : i32 to index
    %c0_17 = arith.constant 0 : index
    %37 = vector.load %arg4[%36, %c0_17] : memref<16x128xf32, #tpu.memory_space<vmem>>, vector<16x128xf32>
    %38 = vector.broadcast %1 : f32 to vector<16x128xf32>
    %39 = arith.cmpf ogt, %37, %38 : vector<16x128xf32>
    %40 = vector.broadcast %16 : i32 to vector<16x128xi32>
    %41 = arith.select %39, %40, %31 : vector<16x128xi1>, vector<16x128xi32>
    %42 = vector.broadcast %2 : f32 to vector<16x128xf32>
    %43 = arith.cmpf ogt, %37, %42 : vector<16x128xf32>
    %44 = vector.broadcast %17 : i32 to vector<16x128xi32>
    %45 = arith.select %43, %44, %41 : vector<16x128xi1>, vector<16x128xi32>
    %46 = vector.broadcast %3 : f32 to vector<16x128xf32>
    %47 = arith.cmpf ogt, %37, %46 : vector<16x128xf32>
    %48 = vector.broadcast %18 : i32 to vector<16x128xi32>
    %49 = arith.select %47, %48, %45 : vector<16x128xi1>, vector<16x128xi32>
    %50 = vector.broadcast %4 : f32 to vector<16x128xf32>
    %51 = arith.cmpf ogt, %37, %50 : vector<16x128xf32>
    %52 = vector.broadcast %19 : i32 to vector<16x128xi32>
    %53 = arith.select %51, %52, %49 : vector<16x128xi1>, vector<16x128xi32>
    %54 = vector.broadcast %5 : f32 to vector<16x128xf32>
    %55 = arith.cmpf ogt, %37, %54 : vector<16x128xf32>
    %56 = vector.broadcast %20 : i32 to vector<16x128xi32>
    %57 = arith.select %55, %56, %53 : vector<16x128xi1>, vector<16x128xi32>
    %58 = vector.broadcast %6 : f32 to vector<16x128xf32>
    %59 = arith.cmpf ogt, %37, %58 : vector<16x128xf32>
    %60 = vector.broadcast %21 : i32 to vector<16x128xi32>
    %61 = arith.select %59, %60, %57 : vector<16x128xi1>, vector<16x128xi32>
    %62 = vector.broadcast %7 : f32 to vector<16x128xf32>
    %63 = arith.cmpf ogt, %37, %62 : vector<16x128xf32>
    %64 = vector.broadcast %22 : i32 to vector<16x128xi32>
    %65 = arith.select %63, %64, %61 : vector<16x128xi1>, vector<16x128xi32>
    %66 = vector.broadcast %8 : f32 to vector<16x128xf32>
    %67 = arith.cmpf ogt, %37, %66 : vector<16x128xf32>
    %68 = vector.broadcast %23 : i32 to vector<16x128xi32>
    %69 = arith.select %67, %68, %65 : vector<16x128xi1>, vector<16x128xi32>
    %70 = vector.broadcast %9 : f32 to vector<16x128xf32>
    %71 = arith.cmpf ogt, %37, %70 : vector<16x128xf32>
    %72 = vector.broadcast %24 : i32 to vector<16x128xi32>
    %73 = arith.select %71, %72, %69 : vector<16x128xi1>, vector<16x128xi32>
    %74 = vector.broadcast %10 : f32 to vector<16x128xf32>
    %75 = arith.cmpf ogt, %37, %74 : vector<16x128xf32>
    %76 = vector.broadcast %25 : i32 to vector<16x128xi32>
    %77 = arith.select %75, %76, %73 : vector<16x128xi1>, vector<16x128xi32>
    %78 = vector.broadcast %11 : f32 to vector<16x128xf32>
    %79 = arith.cmpf ogt, %37, %78 : vector<16x128xf32>
    %80 = vector.broadcast %26 : i32 to vector<16x128xi32>
    %81 = arith.select %79, %80, %77 : vector<16x128xi1>, vector<16x128xi32>
    %82 = vector.broadcast %12 : f32 to vector<16x128xf32>
    %83 = arith.cmpf ogt, %37, %82 : vector<16x128xf32>
    %84 = vector.broadcast %27 : i32 to vector<16x128xi32>
    %85 = arith.select %83, %84, %81 : vector<16x128xi1>, vector<16x128xi32>
    %86 = vector.broadcast %13 : f32 to vector<16x128xf32>
    %87 = arith.cmpf ogt, %37, %86 : vector<16x128xf32>
    %88 = vector.broadcast %28 : i32 to vector<16x128xi32>
    %89 = arith.select %87, %88, %85 : vector<16x128xi1>, vector<16x128xi32>
    %90 = vector.broadcast %14 : f32 to vector<16x128xf32>
    %91 = arith.cmpf ogt, %37, %90 : vector<16x128xf32>
    %92 = vector.broadcast %29 : i32 to vector<16x128xi32>
    %93 = arith.select %91, %92, %89 : vector<16x128xi1>, vector<16x128xi32>
    %94 = vector.broadcast %15 : f32 to vector<16x128xf32>
    %95 = arith.cmpf ogt, %37, %94 : vector<16x128xf32>
    %96 = vector.broadcast %30 : i32 to vector<16x128xi32>
    %97 = arith.select %95, %96, %93 : vector<16x128xi1>, vector<16x128xi32>
    %98 = arith.index_cast %35 : i32 to index
    %c0_18 = arith.constant 0 : index
    %99 = vector.load %arg5[%98, %c0_18] : memref<16x128xi32, #tpu.memory_space<vmem>>, vector<16x128xi32>
    tpu.vector_store %arg5[%98, %c0_18], %97 {strides = array<i32>} : memref<16x128xi32, #tpu.memory_space<vmem>>, vector<16x128xi32>,
    %c1_i32_19 = arith.constant 1 : i32
    return
  }
  func.func @transform_0(%arg0: i32) -> i32 {
    %c0_i32 = arith.constant 0 : i32
    %c0_i32_0 = arith.constant 0 : i32
    return %c0_i32 : i32
  }
  func.func @transform_1(%arg0: i32) -> i32 {
    %c0_i32 = arith.constant 0 : i32
    %c0_i32_0 = arith.constant 0 : i32
    return %c0_i32 : i32
  }
  func.func @transform_2(%arg0: i32) -> i32 {
    %c0_i32 = arith.constant 0 : i32
    %c0_i32_0 = arith.constant 0 : i32
    return %c0_i32 : i32
  }
  func.func @transform_3(%arg0: i32) -> (i32, i32) {
    %c0_i32 = arith.constant 0 : i32
    %c0_i32_0 = arith.constant 0 : i32
    return %arg0, %c0_i32 : i32, i32
  }
  func.func @transform_4(%arg0: i32) -> (i32, i32) {
    %c0_i32 = arith.constant 0 : i32
    %c0_i32_0 = arith.constant 0 : i32
    return %arg0, %c0_i32 : i32, i32
  }
}

</mosaic_0001>

<bundles_post_ra>
// kernel: tpu_custom_call.1
= control target key start
LH: loop header
LB: loop body
LE: loop exit
PB: predicated region body
PF: predicated region fallthrough
CT: control target
= control target key end

     0   :  { %10 = vsyncpa [#allocation6], 0  ;;  %s647_s0 = inlined_call_operand.vmem [shape: f32[15], index: 0, kind: input, shape index: {}]   ;;  %s648_s1 = inlined_call_operand.vmem [shape: s32[15], index: 1, kind: input, shape index: {}]   ;;  %s649_s2 = inlined_call_operand.<no memory space> [shape: s32[1], index: 2, kind: input, shape index: {}]   ;;  %s650_s3 = inlined_call_operand.hbm [shape: f32[16,128], index: 3, kind: input, shape index: {}]   ;;  %s651_s4 = inlined_call_operand.hbm [shape: s32[16,128], index: 4, kind: output, shape index: {}]  }
   0x1   :  { %11 = vsyncpa [#allocation8], 0 }
   0x2   :  { %12 = vsyncpa [#allocation4], 0 }
   0x3   :  { %13 = vsyncpa [#allocation5], 0  ;;  %s20_s17 = sshll.u32 %s647_s0, 4  ;;  %s30_s20 = sshll.u32 %s648_s1, 4  ;;  %s21_s17 = int_to_ptr.vmem [resolvable:$true] %s20_s17  ;;  %s31_s20 = int_to_ptr.vmem [resolvable:$true] %s30_s20 }
   0x4   :  { %s237_s21 = scalar_lea.vmem %s21_s17, 16  ;;  %p242_p1 = scmp.lt.s32.totalorder %s21_s17, %s21_s17 }
   0x5   :  { %p238_p0 = scmp.ne.s32.totalorder %s21_s17, %s237_s21  ;;  %p243_p2 = scmp.lt.s32.totalorder %s237_s21, %s237_s21 }
   0x7   :  { %p244_p3 = por %p243_p2, %p242_p1 }
   0x9   :  { %p245_p4 = pnand %p244_p3, %p238_p0 }
   0xb   :  { %248 = shalt.err (!%p245_p4)
}
   0xc   :  { %s309_s22 = smov [#allocation3]   ;;  %s249_s23 = scalar_lea.vmem %s31_s20, 16 }
   0xd   :  { %23 = dma.vmem_to_smem %s21_s17, 16, %s309_s22, [#allocation6]  }
   0xe   :  { %p250_p5 = scmp.ne.s32.totalorder %s31_s20, %s249_s23  ;;  %p254_p6 = scmp.lt.s32.totalorder %s31_s20, %s31_s20 }
   0xf   :  { %p255_p7 = scmp.lt.s32.totalorder %s249_s23, %s249_s23 }
  0x11   :  { %p256_p8 = por %p255_p7, %p254_p6 }
  0x13   :  { %p257_p9 = pnand %p256_p8, %p250_p5 }
  0x15   :  { %260 = shalt.err (!%p257_p9)
}
  0x16   :  { %s310_s0 = smov [#allocation7]   ;;  %s311_s1 = smov [#allocation9]  }
  0x17   :  { %33 = dma.vmem_to_smem %s31_s20, 16, %s310_s0, [#allocation8]  }
  0x18   :  { %s41_s24 = sshll.u32 %s311_s1, 4  ;;  %s42_s24 = int_to_ptr.vmem [resolvable:$true] %s41_s24 }
  0x19   :  { %s269_s25 = scalar_lea.vmem %s42_s24, 256  ;;  %p274_p11 = scmp.lt.s32.totalorder %s42_s24, %s42_s24 }
  0x1a   :  { %p270_p10 = scmp.ne.s32.totalorder %s42_s24, %s269_s25  ;;  %p275_p12 = scmp.lt.s32.totalorder %s269_s25, %s269_s25 }
  0x1c   :  { %p276_p13 = por %p275_p12, %p274_p11 }
  0x1e   :  { %p277_p0 = pnand %p276_p13, %p270_p10 }
  0x20   :  { %280 = shalt.err (!%p277_p0)
}
  0x21   :  { %s312_s26 = smov 128   ;;  %s313_s27 = smov 8  }
  0x22   :  { %47 = dma.hbm_to_vmem [thread:$0]  %s650_s3, 256, %s42_s24, [#allocation4], %s312_s26, %s312_s26, %s313_s27  }
  0x23   :  { %301 = dma.done.wait [#allocation6], 16  }
  0x24   :  { %302 = vsyncadd [#allocation6], 4294967280 }
  0x25   :  { %303 = dma.done.wait [#allocation8], 16  }
  0x26   :  { %304 = vsyncadd [#allocation8], 4294967280 }
  0x27   :  { %305 = dma.done.wait [#allocation4], 256  }
  0x28   :  { %306 = vsyncadd [#allocation4], 4294967040 }
  0x29   :  { %57 = sfence }
  0x2a   :  { %s59_s30 = sld [smem:[#allocation3]]  ;;  %v372_v0 = vld [vmem:[#allocation9] sm:$0xff]  ;;  %v374_v2 = vld [vmem:[#allocation9 + $0x8] sm:$0xff]  ;;  %v89_v5 = vstv %s649_s2  ;;  %v674_v25 = vmov 0  ;;  %v676_v26 = vmov 0  ;;  %v680_v28 = vmov 0 }
  0x2b   :  { %s203_s5 = sld [smem:[#allocation3 + $0x1]]  ;;  %v682_v29 = vmov 0  ;;  %v684_v30 = vmov 0  ;;  %v688_v32 = vmov 0 }
  0x2c   :  { %s352_s6 = sld [smem:[#allocation3 + $0x2]] }
  0x2d   :  { %s354_s7 = sld [smem:[#allocation3 + $0x3]] }
  0x2e   :  { %s356_s8 = sld [smem:[#allocation3 + $0x4]] }
  0x2f   :  { %s358_s9 = sld [smem:[#allocation3 + $0x5]] }
  0x30   :  { %s360_s10 = sld [smem:[#allocation3 + $0x6]]  ;;  %v92_v1 = vstv %s59_s30 }
  0x31   :  { %s362_s3 = sld [smem:[#allocation3 + $0x7]]  ;;  %v98_v3 = vstv %s203_s5  ;;  %vm387_vm0 = vcmp.gt.f32.partialorder %v372_v0, %v92_v1  ;;  %vm393_vm1 = vcmp.gt.f32.partialorder %v374_v2, %v92_v1 }
  0x32   :  { %s364_s11 = sld [smem:[#allocation3 + $0x8]]  ;;  %v104_v4 = vstv %s352_s6  ;;  %vm400_vm2 = vcmp.gt.f32.partialorder %v372_v0, %v98_v3  ;;  %vm407_vm3 = vcmp.gt.f32.partialorder %v374_v2, %v98_v3 }
  0x33   :  { %s366_s12 = sld [smem:[#allocation3 + $0x9]]  ;;  %v110_v7 = vstv %s354_s7  ;;  %vm414_vm4 = vcmp.gt.f32.partialorder %v372_v0, %v104_v4  ;;  %vm421_vm5 = vcmp.gt.f32.partialorder %v374_v2, %v104_v4 }
  0x34   :  { %s368_s13 = sld [smem:[#allocation3 + $0xa]]  ;;  %v116_v10 = vstv %s356_s8  ;;  %vm428_vm6 = vcmp.gt.f32.partialorder %v372_v0, %v110_v7  ;;  %vm435_vm7 = vcmp.gt.f32.partialorder %v374_v2, %v110_v7  ;;  %s314_s8 = smov [#allocation10]  }
  0x35   :  { %s370_s14 = sld [smem:[#allocation3 + $0xb]]  ;;  %v122_v11 = vstv %s358_s9  ;;  %vm442_vm8 = vcmp.gt.f32.partialorder %v372_v0, %v116_v10  ;;  %vm453_vm10 = vcmp.gt.f32.partialorder %v374_v2, %v116_v10  ;;  %s189_s9 = sshll.u32 %s314_s8, 4  ;;  %s190_s9 = int_to_ptr.vmem [resolvable:$true] %s189_s9 }
  0x36   :  { %s376_s15 = sld [smem:[#allocation3 + $0xc]]  ;;  %v128_v14 = vstv %s360_s10  ;;  %vm447_vm9 = vcmp.gt.f32.partialorder %v372_v0, %v122_v11  ;;  %vm470_vm13 = vcmp.gt.f32.partialorder %v374_v2, %v122_v11  ;;  %s281_s10 = scalar_lea.vmem %s190_s9, 256 }
  0x37   :  { %s378_s16 = sld [smem:[#allocation3 + $0xd]]  ;;  %v134_v15 = vstv %s362_s3  ;;  %vm460_vm11 = vcmp.gt.f32.partialorder %v372_v0, %v128_v14  ;;  %vm475_vm14 = vcmp.gt.f32.partialorder %v374_v2, %v128_v14  ;;  %p282_p1 = scmp.ne.s32.totalorder %s190_s9, %s281_s10 }
  0x38   :  { %s381_s17 = sld [smem:[#allocation3 + $0xe]]  ;;  %v140_v18 = vstv %s364_s11  ;;  %v675_v25 = vsel %vm460_vm11, 4294967295, %v674_v25  ;;  %vm465_vm12 = vcmp.gt.f32.partialorder %v372_v0, %v134_v15  ;;  %v681_v28 = vsel %vm475_vm14, 4294967295, %v680_v28  ;;  %p286_p2 = scmp.lt.s32.totalorder %s190_s9, %s190_s9 }
  0x39   :  { %s397_s20 = sld [smem:[#allocation7]]  ;;  %v146_v19 = vstv %s366_s12  ;;  %v677_v26 = vsel %vm465_vm12, 4294967295, %v676_v26  ;;  %vm482_vm15 = vcmp.gt.f32.partialorder %v372_v0, %v140_v18  ;;  %vm492_vm11 = vcmp.gt.f32.partialorder %v374_v2, %v134_v15  ;;  %p287_p3 = scmp.lt.s32.totalorder %s281_s10, %s281_s10 }
  0x3a   :  { %s411_s2 = sld [smem:[#allocation7 + $0x1]]  ;;  %v152_v23 = vstv %s368_s13  ;;  %v683_v29 = vsel %vm482_vm15, 4294967295, %v682_v29  ;;  %vm487_vm12 = vcmp.gt.f32.partialorder %v372_v0, %v146_v19  ;;  %vm497_vm14 = vcmp.gt.f32.partialorder %v374_v2, %v140_v18 }
  0x3b   :  { %s425_s21 = sld [smem:[#allocation7 + $0x2]]  ;;  %v685_v30 = vsel %vm487_vm12, 4294967295, %v684_v30  ;;  %v689_v32 = vsel %vm497_vm14, 4294967295, %v688_v32  ;;  %vm505_vm15 = vcmp.gt.f32.partialorder %v372_v0, %v152_v23  ;;  %v158_v35 = vstv %s370_s14  ;;  %p288_p4 = por %p287_p3, %p286_p2 }
  0x3c   :  { %s439_s22 = sld [smem:[#allocation7 + $0x3]]  ;;  %vm511_vm12 = vcmp.gt.f32.partialorder %v374_v2, %v146_v19  ;;  %vm523_vm14 = vcmp.gt.f32.partialorder %v374_v2, %v152_v23  ;;  %v164_v43 = vstv %s376_s15 }
  0x3d   :  { %s457_s23 = sld [smem:[#allocation7 + $0x4]]  ;;  %v170_v59 = vstv %s378_s16  ;;  %p289_p5 = pnand %p288_p4, %p282_p1 }
  0x3e   :  { %s479_s0 = sld [smem:[#allocation7 + $0x5]] }
  0x3f   :  { %s501_s1 = sld [smem:[#allocation7 + $0x6]]  ;;  %v95_v33 = vstv %s397_s20 }
  0x40   :  { %s515_s24 = sld [smem:[#allocation7 + $0x7]]  ;;  %v96_v37 = vsel %vm387_vm0, %v95_v33, %v89_v5  ;;  %v101_v38 = vstv %s411_s2  ;;  %v97_v39 = vsel %vm393_vm1, %v95_v33, %v89_v5  ;;  %vm541_vm0 = vcmp.gt.f32.partialorder %v372_v0, %v158_v35 }
  0x41   :  { %s527_s25 = sld [smem:[#allocation7 + $0x8]]  ;;  %v102_v41 = vsel %vm400_vm2, %v101_v38, %v96_v37  ;;  %v107_v42 = vstv %s425_s21  ;;  %v103_v44 = vsel %vm407_vm3, %v101_v38, %v97_v39  ;;  %vm555_vm1 = vcmp.gt.f32.partialorder %v374_v2, %v158_v35 }
  0x42   :  { %s535_s28 = sld [smem:[#allocation7 + $0x9]]  ;;  %v108_v45 = vsel %vm414_vm4, %v107_v42, %v102_v41  ;;  %v113_v46 = vstv %s439_s22  ;;  %v109_v48 = vsel %vm421_vm5, %v107_v42, %v103_v44  ;;  %vm565_vm2 = vcmp.gt.f32.partialorder %v372_v0, %v164_v43 }
  0x43   :  { %s547_s29 = sld [smem:[#allocation7 + $0xa]]  ;;  %v114_v49 = vsel %vm428_vm6, %v113_v46, %v108_v45  ;;  %v119_v50 = vstv %s457_s23  ;;  %v115_v51 = vsel %vm435_vm7, %v113_v46, %v109_v48  ;;  %vm702_vm3 = vnez %v675_v25 }
  0x44   :  { %s559_s30 = sld [smem:[#allocation7 + $0xb]]  ;;  %v120_v53 = vsel %vm442_vm8, %v119_v50, %v114_v49  ;;  %v125_v54 = vstv %s479_s0  ;;  %v121_v56 = vsel %vm453_vm10, %v119_v50, %v115_v51  ;;  %vm703_vm4 = vnez %v681_v28 }
  0x45   :  { %s571_s5 = sld [smem:[#allocation7 + $0xc]]  ;;  %v126_v57 = vsel %vm447_vm9, %v125_v54, %v120_v53  ;;  %v131_v58 = vstv %s501_s1  ;;  %v127_v60 = vsel %vm470_vm13, %v125_v54, %v121_v56  ;;  %vm587_vm5 = vcmp.gt.f32.partialorder %v374_v2, %v164_v43 }
  0x46   :  { %s579_s6 = sld [smem:[#allocation7 + $0xd]]  ;;  %v132_v61 = vsel %vm702_vm3, %v131_v58, %v126_v57  ;;  %v137_v62 = vstv %s515_s24  ;;  %v133_v63 = vsel %vm703_vm4, %v131_v58, %v127_v60  ;;  %vm706_vm6 = vnez %v677_v26 }
  0x47   :  { %s591_s7 = sld [smem:[#allocation7 + $0xe]]  ;;  %v138_v3 = vsel %vm706_vm6, %v137_v62, %v132_v61  ;;  %v143_v4 = vstv %s527_s25  ;;  %v176_v5 = vstv %s381_s17  ;;  %v139_v6 = vsel %vm492_vm11, %v137_v62, %v133_v63 }
  0x48   :  { %vm707_vm7 = vnez %v683_v29  ;;  %v149_v8 = vstv %s535_s28  ;;  %vm603_vm8 = vcmp.gt.f32.partialorder %v372_v0, %v170_v59  ;;  %vm710_vm9 = vnez %v689_v32 }
  0x49   :  { %v144_v7 = vsel %vm707_vm7, %v143_v4, %v138_v3  ;;  %v145_v10 = vsel %vm710_vm9, %v143_v4, %v139_v6  ;;  %vm711_vm10 = vnez %v685_v30  ;;  %v155_v12 = vstv %s547_s29 }
  0x4a   :  { %v150_v11 = vsel %vm711_vm10, %v149_v8, %v144_v7  ;;  %v151_v13 = vsel %vm511_vm12, %v149_v8, %v145_v10  ;;  %vm615_vm11 = vcmp.gt.f32.partialorder %v374_v2, %v170_v59  ;;  %v161_v16 = vstv %s559_s30 }
  0x4b   :  { %v156_v15 = vsel %vm505_vm15, %v155_v12, %v150_v11  ;;  %vm177_vm13 = vcmp.gt.f32.partialorder %v372_v0, %v176_v5  ;;  %v157_v17 = vsel %vm523_vm14, %v155_v12, %v151_v13  ;;  %v167_v19 = vstv %s571_s5 }
  0x4c   :  { %v162_v18 = vsel %vm541_vm0, %v161_v16, %v156_v15  ;;  %v163_v20 = vsel %vm555_vm1, %v161_v16, %v157_v17  ;;  %vm178_vm12 = vcmp.gt.f32.partialorder %v374_v2, %v176_v5  ;;  %v173_v22 = vstv %s579_s6 }
  0x4d   :  { %v168_v21 = vsel %vm565_vm2, %v167_v19, %v162_v18  ;;  %v169_v0 = vsel %vm587_vm5, %v167_v19, %v163_v20  ;;  %v179_v24 = vstv %s591_s7 }
  0x4e   :  { %v174_v23 = vsel %vm603_vm8, %v173_v22, %v168_v21  ;;  %v175_v25 = vsel %vm615_vm11, %v173_v22, %v169_v0 }
  0x4f   :  { %v180_v26 = vsel %vm177_vm13, %v179_v24, %v174_v23  ;;  %v181_v27 = vsel %vm178_vm12, %v179_v24, %v175_v25 }
  0x50   :  { %182 = vst [vmem:[#allocation10] sm:$0xff] %v180_v26  ;;  %183 = vst [vmem:[#allocation10 + $0x8] sm:$0xff] %v181_v27 }
  0x51   :  { %292 = shalt.err (!%p289_p5)
}
  0x52   :  { %195 = dma.vmem_to_hbm [thread:$0]  %s190_s9, 256, %s651_s4, [#allocation5], %s312_s26, %s312_s26, %s313_s27  }
  0x53   :  { %307 = dma.done.wait [#allocation5], 256  }
  0x54   :  { %308 = vsyncadd [#allocation5], 4294967040 }
  0x55   :  { %199 = vsyncpa [#allocation4], 1 }
  0x56   :  { %200 = vsyncpa [#allocation5], 1 }
  0x57   :  { %201 = vsyncpa [#allocation6], 1 }
  0x58   :  { %202 = vsyncpa [#allocation8], 1 }

</bundles_post_ra>
